<compile_context>
chip_gen: v7x
topology: tpu7x:2x2x1
jax: 0.10.0
libtpu: 0.0.40
codegen_flags: <defaults>
</compile_context>

<pallas_src>
import functools

import jax
import jax.numpy as jnp
from jax import lax
from jax.experimental import pallas as pl
from jax.experimental.pallas import tpu as pltpu


def _round_up(x, m):
    return ((x + m - 1) // m) * m


def _index_loss_kernel(pred_ref, true_ref, rmse_ref, *, inv_b, b, f, tb, tf,
                       mask_rows, mask_cols):
    # grid = (feature tiles, batch tiles); batch is the innermost reduction axis.
    j = pl.program_id(0)  # feature tile  ("parallel")
    i = pl.program_id(1)  # batch tile    ("arbitrary", reduction)

    @pl.when(i == 0)
    def _():
        rmse_ref[...] = jnp.zeros_like(rmse_ref)

    diff = pred_ref[...].astype(jnp.float32) - true_ref[...].astype(jnp.float32)

    # Zero out-of-bounds rows/cols of ragged edge tiles BEFORE squaring: the OOB part of
    # an edge block's VMEM buffer is unspecified and must not reach the per-feature sums.
    # mask_rows / mask_cols are Python-static; aligned shapes emit no masking code.
    mask = None
    if mask_rows:
        rows = lax.broadcasted_iota(jnp.int32, (tb, tf), 0)
        mask = rows < (b - i * tb)
    if mask_cols:
        cols = lax.broadcasted_iota(jnp.int32, (tb, tf), 1)
        cmask = cols < (f - j * tf)
        mask = cmask if mask is None else jnp.logical_and(mask, cmask)
    if mask is not None:
        diff = jnp.where(mask, diff, 0.0)

    # Accumulate raw per-feature sum of squares; the (1, tf) output block stays resident
    # in VMEM across the whole batch axis (same output block index for every batch step).
    rmse_ref[...] += jnp.sum(diff * diff, axis=0, keepdims=True)

    @pl.when(i == pl.num_programs(1) - 1)
    def _():
        # Divide by the TRUE batch size and apply sqrt exactly once.
        rmse_ref[...] = jnp.sqrt(rmse_ref[...] * inv_b)


def index_loss(index_pred, index_true, *, tile_bytes=4 << 20, max_tb=512):
    """mean over features of sqrt(mean over batch of (pred - true)**2)."""
    assert index_pred.shape == index_true.shape
    B, F = index_pred.shape

    # Batch tile: sublane-aligned (multiple of 8) and never larger than B.
    tb = min(max_tb, (B // 8) * 8) if B >= 8 else B

    # Feature tile: lane-dense (multiple of 128), never larger than F, sized from the
    # per-input-tile byte budget so small-batch cases get wide tiles.
    if F >= 128:
        tf_cap = (F // 128) * 128
        tf_budget = max(128, (tile_bytes // (tb * 4)) // 128 * 128)
        tf = min(tf_cap, tf_budget)
        # v7x has 2 TensorCores; the "parallel" feature axis needs >= 2 tiles to use both.
        if pl.cdiv(F, tf) < 2 and F >= 256:
            tf = _round_up(pl.cdiv(F, 2), 128)
    else:
        tf = F  # sub-128 feature count: block equals the full dim.

    nf = pl.cdiv(F, tf)
    nb = pl.cdiv(B, tb)

    kernel = functools.partial(
        _index_loss_kernel,
        inv_b=1.0 / B, b=B, f=F, tb=tb, tf=tf,
        mask_rows=(B % tb) != 0, mask_cols=(F % tf) != 0,
    )

    rmse = pl.pallas_call(
        kernel,
        out_shape=jax.ShapeDtypeStruct((1, F), jnp.float32),
        grid_spec=pltpu.PrefetchScalarGridSpec(
            num_scalar_prefetch=0,
            grid=(nf, nb),  # feature axis parallel, batch (reduction) axis last
            in_specs=[
                pl.BlockSpec((tb, tf), lambda j, i: (i, j)),
                pl.BlockSpec((tb, tf), lambda j, i: (i, j)),
            ],
            out_specs=pl.BlockSpec((1, tf), lambda j, i: (0, j)),
        ),
        compiler_params=pltpu.CompilerParams(
            dimension_semantics=("parallel", "arbitrary"),
            vmem_limit_bytes=32 * 1024 * 1024,
        ),
    )(index_pred, index_true)

    # Tiny epilogue (mean over the F per-feature RMSEs); left to XLA so it fuses.
    return jnp.mean(rmse)


def _ref_loss(pred, true):
    return jnp.mean(jnp.sqrt(jnp.mean((pred - true) ** 2, axis=0)))


if __name__ == "__main__":
    key = jax.random.PRNGKey(0)

    # Primary small demo shape consistent with the module: batch=8, features=32.
    k1, k2, k3, k4 = jax.random.split(key, 4)
    B, F = 8, 32
    index_pred = jax.random.normal(k1, (B, F), dtype=jnp.float32)
    index_true = jax.random.normal(k2, (B, F), dtype=jnp.float32)

    loss = jax.block_until_ready(index_loss(index_pred, index_true))
    ref = _ref_loss(index_pred, index_true)
    assert jnp.allclose(loss, ref, rtol=1e-5, atol=1e-6), (loss, ref)

    # Secondary ragged shape to exercise the in-kernel edge masking path.
    B2, F2 = 13, 200
    p2 = jax.random.normal(k3, (B2, F2), dtype=jnp.float32)
    t2 = jax.random.normal(k4, (B2, F2), dtype=jnp.float32)
    loss2 = jax.block_until_ready(index_loss(p2, t2))
    ref2 = _ref_loss(p2, t2)
    assert jnp.allclose(loss2, ref2, rtol=1e-5, atol=1e-6), (loss2, ref2)

    print("KERNEL_OK")
</pallas_src>

<mosaic_0001>
module attributes {stable_mosaic.version = 11 : i64} {
  func.func @_index_loss_kernel(%arg0: i32, %arg1: i32, %arg2: memref<8x32xf32, #tpu.memory_space<vmem>>, %arg3: memref<8x32xf32, #tpu.memory_space<vmem>>, %arg4: memref<1x32xf32, #tpu.memory_space<vmem>>) attributes {dimension_semantics = [#tpu.dimension_semantics<parallel>, #tpu.dimension_semantics<arbitrary>], iteration_bounds = array<i64: 1, 1>, scalar_prefetch = 0 : i64, scratch_operands = 0 : i64, tpu.core_type = #tpu.core_type<tc>, window_params = [{transform_indices = @transform_0, window_bounds = array<i64: 8, 32>}, {transform_indices = @transform_1, window_bounds = array<i64: 8, 32>}, {transform_indices = @transform_2, window_bounds = array<i64: 1, 32>}]} {
    %c0_i32 = arith.constant 0 : i32
    %0 = arith.cmpi eq, %arg1, %c0_i32 : i32
    %1 = arith.extui %0 : i1 to i32
    %c0_i32_0 = arith.constant 0 : i32
    %2 = arith.cmpi ne, %1, %c0_i32_0 : i32
    scf.if %2 {
      %cst_10 = arith.constant 0.000000e+00 : f32
      %15 = vector.broadcast %cst_10 : f32 to vector<1x32xf32>
      %c0_11 = arith.constant 0 : index
      %c0_12 = arith.constant 0 : index
      %16 = vector.load %arg4[%c0_11, %c0_12] : memref<1x32xf32, #tpu.memory_space<vmem>>, vector<1x32xf32>
      tpu.vector_store %arg4[%c0_11, %c0_12], %15 {strides = array<i32>} : memref<1x32xf32, #tpu.memory_space<vmem>>, vector<1x32xf32>,
    } else {
    }
    %c0 = arith.constant 0 : index
    %c0_1 = arith.constant 0 : index
    %3 = vector.load %arg2[%c0, %c0_1] : memref<8x32xf32, #tpu.memory_space<vmem>>, vector<8x32xf32>
    %c0_2 = arith.constant 0 : index
    %c0_3 = arith.constant 0 : index
    %4 = vector.load %arg3[%c0_2, %c0_3] : memref<8x32xf32, #tpu.memory_space<vmem>>, vector<8x32xf32>
    %5 = arith.subf %3, %4 : vector<8x32xf32>
    %c0_4 = arith.constant 0 : index
    %c0_5 = arith.constant 0 : index
    %6 = vector.load %arg4[%c0_4, %c0_5] : memref<1x32xf32, #tpu.memory_space<vmem>>, vector<1x32xf32>
    %7 = arith.mulf %5, %5 : vector<8x32xf32>
    %cst = arith.constant dense<0.000000e+00> : vector<32xf32>
    %8 = vector.multi_reduction <add>, %7, %cst [0] : vector<8x32xf32> to vector<32xf32>
    %9 = vector.shape_cast %8 : vector<32xf32> to vector<1x32xf32>
    %10 = arith.addf %6, %9 : vector<1x32xf32>
    %c0_6 = arith.constant 0 : index
    %c0_7 = arith.constant 0 : index
    %11 = vector.load %arg4[%c0_6, %c0_7] : memref<1x32xf32, #tpu.memory_space<vmem>>, vector<1x32xf32>
    tpu.vector_store %arg4[%c0_6, %c0_7], %10 {strides = array<i32>} : memref<1x32xf32, #tpu.memory_space<vmem>>, vector<1x32xf32>,
    %c0_i32_8 = arith.constant 0 : i32
    %12 = arith.cmpi eq, %arg1, %c0_i32_8 : i32
    %13 = arith.extui %12 : i1 to i32
    %c0_i32_9 = arith.constant 0 : i32
    %14 = arith.cmpi ne, %13, %c0_i32_9 : i32
    scf.if %14 {
      %c0_10 = arith.constant 0 : index
      %c0_11 = arith.constant 0 : index
      %15 = vector.load %arg4[%c0_10, %c0_11] : memref<1x32xf32, #tpu.memory_space<vmem>>, vector<1x32xf32>
      %cst_12 = arith.constant 1.250000e-01 : f32
      %16 = vector.broadcast %cst_12 : f32 to vector<1x32xf32>
      %17 = arith.mulf %15, %16 : vector<1x32xf32>
      %18 = math.sqrt %17 : vector<1x32xf32>
      %c0_13 = arith.constant 0 : index
      %c0_14 = arith.constant 0 : index
      %19 = vector.load %arg4[%c0_13, %c0_14] : memref<1x32xf32, #tpu.memory_space<vmem>>, vector<1x32xf32>
      tpu.vector_store %arg4[%c0_13, %c0_14], %18 {strides = array<i32>} : memref<1x32xf32, #tpu.memory_space<vmem>>, vector<1x32xf32>,
    } else {
    }
    return
  }
  func.func @transform_0(%arg0: i32, %arg1: i32) -> (i32, i32) {
    %c0_i32 = arith.constant 0 : i32
    return %arg1, %arg0 : i32, i32
  }
  func.func @transform_1(%arg0: i32, %arg1: i32) -> (i32, i32) {
    %c0_i32 = arith.constant 0 : i32
    return %arg1, %arg0 : i32, i32
  }
  func.func @transform_2(%arg0: i32, %arg1: i32) -> (i32, i32) {
    %c0_i32 = arith.constant 0 : i32
    %c0_i32_0 = arith.constant 0 : i32
    return %c0_i32, %arg0 : i32, i32
  }
}

</mosaic_0001>

<bundles_post_ra>
// kernel: tpu_custom_call.1
= control target key start
LH: loop header
LB: loop body
LE: loop exit
PB: predicated region body
PF: predicated region fallthrough
CT: control target
= control target key end

     0   :  { %7 = vsyncpa [#allocation3], 0  ;;  %s223_s0 = inlined_call_operand.hbm [shape: f32[8,32], index: 0, kind: input, shape index: {}]   ;;  %s224_s1 = inlined_call_operand.hbm [shape: f32[8,32], index: 1, kind: input, shape index: {}]   ;;  %s225_s2 = inlined_call_operand.hbm [shape: f32[1,32], index: 2, kind: output, shape index: {}]  }
   0x1   :  { %8 = vsyncpa [#allocation6], 0 }
   0x2   :  { %9 = vsyncpa [#allocation4], 0  ;;  %s165_s9 = smov [#allocation2]   ;;  %s166_s11 = smov [#allocation5]  }
   0x3   :  { %s16_s10 = sshll.u32 %s165_s9, 4  ;;  %s26_s12 = sshll.u32 %s166_s11, 4  ;;  %s17_s10 = int_to_ptr.vmem [resolvable:$true] %s16_s10  ;;  %s27_s12 = int_to_ptr.vmem [resolvable:$true] %s26_s12 }
   0x4   :  { %s93_s15 = scalar_lea.hbm %s223_s0, 128 }
   0x5   :  { %p94_p0 = scmp.ne.s32.totalorder %s223_s0, %s93_s15  ;;  %p97_p1 = scmp.lt.u32.totalorder %s93_s15, %s223_s0 }
   0x7   :  { %p99_p2 = pnand %p97_p1, %p94_p0 }
   0x9   :  { %102 = shalt.err (!%p99_p2)
}
   0xa   :  { %s103_s20 = scalar_lea.vmem %s17_s10, 128  ;;  %p108_p4 = scmp.lt.s32.totalorder %s17_s10, %s17_s10 }
   0xb   :  { %p104_p3 = scmp.ne.s32.totalorder %s17_s10, %s103_s20  ;;  %p109_p5 = scmp.lt.s32.totalorder %s103_s20, %s103_s20 }
   0xd   :  { %p110_p6 = por %p109_p5, %p108_p4 }
   0xf   :  { %p111_p7 = pnand %p110_p6, %p104_p3 }
  0x11   :  { %114 = shalt.err (!%p111_p7)
}
  0x12   :  { %19 = dma.hbm_to_vmem [thread:$0]  %s223_s0, 128, %s17_s10, [#allocation3]  }
  0x13   :  { %s115_s25 = scalar_lea.hbm %s224_s1, 128 }
  0x14   :  { %p116_p8 = scmp.ne.s32.totalorder %s224_s1, %s115_s25  ;;  %p119_p9 = scmp.lt.u32.totalorder %s115_s25, %s224_s1 }
  0x16   :  { %p121_p10 = pnand %p119_p9, %p116_p8 }
  0x18   :  { %124 = shalt.err (!%p121_p10)
}
  0x19   :  { %s125_s30 = scalar_lea.vmem %s27_s12, 128  ;;  %p130_p12 = scmp.lt.s32.totalorder %s27_s12, %s27_s12 }
  0x1a   :  { %p126_p11 = scmp.ne.s32.totalorder %s27_s12, %s125_s30  ;;  %p131_p13 = scmp.lt.s32.totalorder %s125_s30, %s125_s30 }
  0x1c   :  { %p132_p0 = por %p131_p13, %p130_p12 }
  0x1e   :  { %p133_p1 = pnand %p132_p0, %p126_p11 }
  0x20   :  { %136 = shalt.err (!%p133_p1)
}
  0x21   :  { %29 = dma.hbm_to_vmem [thread:$0]  %s224_s1, 128, %s27_s12, [#allocation6]  }
  0x22   :  { %159 = dma.done.wait [#allocation3], 128  }
  0x23   :  { %160 = vsyncadd [#allocation3], 4294967168 }
  0x24   :  { %161 = dma.done.wait [#allocation6], 128  }
  0x25   :  { %162 = vsyncadd [#allocation6], 4294967168  ;;  %vm40_vm0 = vcmask 253952   ;;  %v167_v0 = vmov 0.0   ;;  %v42_v1 = vld [vmem:[#allocation2] sm:$0xff]  ;;  %v43_v2 = vld [vmem:[#allocation5] sm:$0xff] }
  0x26   :  { %41 = vst.msk [vmem:[#allocation7] sm:$0x1] %vm40_vm0, %v167_v0  ;;  %v44_v3 = vsub.f32 %v42_v1, %v43_v2  ;;  %vm47_vm1 = vcmask 261120   ;;  %s168_s1 = smov [#allocation7]  }
  0x27   :  { %s77_s4 = sshll.u32 %s168_s1, 4  ;;  %s78_s4 = int_to_ptr.vmem [resolvable:$true] %s77_s4 }
  0x28   :  { %v46_v4 = vmul.f32 %v44_v3, %v44_v3  ;;  %s137_s5 = scalar_lea.vmem %s78_s4, 16  ;;  %s141_s6 = scalar_lea.vmem %s78_s4, 32 }
  0x29   :  { %p138_p2 = scmp.ne.s32.totalorder %s78_s4, %s137_s5  ;;  %p142_p3 = scmp.lt.s32.totalorder %s78_s4, %s78_s4 }
  0x2a   :  { %v48_v5 = vsel %vm47_vm1, %v46_v4, 0.0  ;;  %p143_p4 = scmp.lt.s32.totalorder %s141_s6, %s137_s5 }
  0x2b   :  { %v49_v6 = vrot.slane %v48_v5, 4 }
  0x2c   :  { %p144_p5 = por %p143_p4, %p142_p3 }
  0x2d   :  { %v50_v7 = vadd.f32 %v49_v6, %v48_v5  ;;  %v45_v11 = vld [vmem:[#allocation7] sm:$0x1] }
  0x2e   :  { %p145_p6 = pnand %p144_p5, %p138_p2 }
  0x2f   :  { %v51_v8 = vrot.slane %v50_v7, 2 }
  0x31   :  { %v52_v9 = vadd.f32 %v51_v8, %v50_v7 }
  0x33   :  { %v53_v10 = vrot.slane %v52_v9, 1 }
  0x35   :  { %v54_v12 = vadd.f32 %v53_v10, %v52_v9 }
  0x37   :  { %v55_v13 = vadd.f32 %v54_v12, %v45_v11 }
  0x39   :  { %57 = vst.msk [vmem:[#allocation7] sm:$0x1] %vm40_vm0, %v55_v13 }
  0x40   :  { %v61_v14 = vld [vmem:[#allocation7] sm:$0x1] }
  0x41   :  { %v62_v15 = vmul.f32 0.125, %v61_v14 }
  0x43   :  { %91 = vrsqrt.f32 %v62_v15  ;;  %vm65_vm2 = vcmp.eq.f32.partialorder %v62_v15, inf  ;;  %v68_v18 = vand.u32 2147483648, %v62_v15  ;;  %vm67_vm3 = vcmp.eq.f32.partialorder %v62_v15, 0.0 }
  0x4d   :  { %v92_v16 = vpop.eup %91 }
  0x4e   :  { %v64_v17 = vmul.f32 %v92_v16, %v62_v15 }
  0x50   :  { %v66_v19 = vsel %vm65_vm2, %v62_v15, %v64_v17 }
  0x51   :  { %v69_v20 = vsel %vm67_vm3, %v68_v18, %v66_v19 }
  0x52   :  { %70 = vst.msk [vmem:[#allocation7] sm:$0x1] %vm40_vm0, %v69_v20 }
  0x53   :  { %148 = shalt.err (!%p145_p6)
}
  0x54   :  { %s149_s9 = scalar_lea.hbm %s225_s2, 16 }
  0x55   :  { %p150_p7 = scmp.ne.s32.totalorder %s225_s2, %s149_s9  ;;  %p153_p8 = scmp.lt.u32.totalorder %s149_s9, %s225_s2 }
  0x57   :  { %p155_p9 = pnand %p153_p8, %p150_p7 }
  0x59   :  { %158 = shalt.err (!%p155_p9)
}
  0x5a   :  { %80 = dma.vmem_to_hbm [thread:$0]  %s78_s4, 16, %s225_s2, [#allocation4]  }
  0x5b   :  { %163 = dma.done.wait [#allocation4], 16  }
  0x5c   :  { %164 = vsyncadd [#allocation4], 4294967280 }
  0x5d   :  { %84 = vsyncpa [#allocation3], 1 }
  0x5e   :  { %85 = vsyncpa [#allocation6], 1 }
  0x5f   :  { %86 = vsyncpa [#allocation4], 1 }

</bundles_post_ra>
